<compile_context>
chip_gen: v6e
topology: v6e:2x2x1
jax: 0.10.0
libtpu: 0.0.40
codegen_flags: <defaults>
</compile_context>

<pallas_src>
import functools

import jax
import jax.numpy as jnp
from jax.experimental import pallas as pl
from jax.experimental.pallas import tpu as pltpu

BETA = 0.95
THRESHOLD = 1.0


def _round_up(n, m):
    return ((n + m - 1) // m) * m


def _spiking_kernel(x_ref, w_ref, b_ref, mem0_ref, spk_ref, mem_ref, *,
                    time_chunk, beta, threshold):
    """One grid step = one (batch tile, chunk of `time_chunk` timesteps)."""
    t_chunk = pl.program_id(1)

    # Load the initial membrane state once per batch tile (mem_ref is the
    # VMEM-resident accumulator for the rest of the time axis).
    @pl.when(t_chunk == 0)
    def _init():
        mem_ref[...] = mem0_ref[...]

    tc, tile_b, f_in = x_ref.shape

    # Non-recurrent part: one MXU matmul for all timesteps of this chunk.
    # Rows are ordered (timestep-major, batch-minor): row = s * tile_b + b.
    x_flat = x_ref[...].reshape(tc * tile_b, f_in)     # sublane-only merge, no lane move
    cur = jnp.dot(x_flat, w_ref[...], preferred_element_type=jnp.float32)
    cur = cur + b_ref[...]                             # bias broadcast, f32, once per chunk

    # Recurrent LIF update (VPU only), statically unrolled over the chunk.
    mem = mem_ref[...]
    # The spike of step s-1 is exactly the subtract-reset condition of step s.
    # Recompute it only at the chunk boundary from the carried-in membrane.
    spk_prev = (mem > threshold).astype(jnp.float32)
    for s in range(time_chunk):
        cur_s = cur[s * tile_b:(s + 1) * tile_b, :]
        mem = beta * mem + cur_s - spk_prev * threshold
        spk_prev = (mem > threshold).astype(jnp.float32)
        spk_ref[s] = spk_prev.astype(spk_ref.dtype)
    mem_ref[...] = mem


def spiking_layer_forward(x_seq, weight, bias, mem0=None, *,
                          beta=BETA, threshold=THRESHOLD,
                          time_chunk=None, batch_tile=None,
                          matmul_dtype=None, spk_dtype=jnp.float32):
    """Fused SpikingLayer forward over T timesteps.

    x_seq : [T, B, F_in]   inputs for the whole spike train
    weight: [F_out, F_in]  nn.Linear weight (PyTorch layout)
    bias  : [F_out]
    mem0  : [B, F_out] or None (None -> snn.Leaky.init_leaky(): zeros)

    Returns (spk_seq [T, B, F_out], mem_final [B, F_out]).
    """
    T, B, F_in = x_seq.shape
    F_out, F_in_w = weight.shape
    assert F_in_w == F_in, "weight / input feature mismatch"

    # ---- TPU-friendly padding / tiling ------------------------------------
    F_out_p = _round_up(F_out, 128)          # lane-dense outputs (unmasked vst)
    B_p = _round_up(B, 8)                    # sublane alignment
    if batch_tile is None:
        batch_tile = B_p if B_p <= 512 else 256
    B_p = _round_up(B_p, batch_tile)
    if time_chunk is None:
        # Largest divisor of T up to 16: big enough for a healthy MXU M-dim,
        # small enough to keep the x / spk chunk blocks modest in VMEM.
        time_chunk = max(c for c in range(1, min(T, 16) + 1) if T % c == 0)
    assert T % time_chunk == 0, "time_chunk must divide T"

    f32 = jnp.float32
    mm_dtype = f32 if matmul_dtype is None else matmul_dtype  # bf16 on v6e/v7x

    # Zero-padded operands: padded output lanes have zero weight & bias, so their
    # membrane stays at 0 < threshold -> no spurious spikes leak into real lanes.
    x_p = jnp.zeros((T, B_p, F_in), mm_dtype).at[:, :B, :].set(x_seq.astype(mm_dtype))
    w_p = jnp.zeros((F_in, F_out_p), mm_dtype).at[:, :F_out].set(weight.T.astype(mm_dtype))
    b_p = jnp.zeros((1, F_out_p), f32).at[:, :F_out].set(bias.astype(f32).reshape(1, F_out))
    if mem0 is None:
        m_p = jnp.zeros((B_p, F_out_p), f32)
    else:
        m_p = jnp.zeros((B_p, F_out_p), f32).at[:B, :F_out].set(mem0.astype(f32))

    grid = (B_p // batch_tile, T // time_chunk)
    kernel = functools.partial(_spiking_kernel, time_chunk=time_chunk,
                               beta=float(beta), threshold=float(threshold))

    # VMEM note: resident W is F_in*F_out_p*itemsize bytes; for MNIST-scale layers
    # this is <1 MiB; double-buffered x / spk chunk blocks dominate and stay well
    # under the v7x 32 MiB scoped budget for the default tile sizes above.
    spk_p, mem_p = pl.pallas_call(
        kernel,
        out_shape=(
            jax.ShapeDtypeStruct((T, B_p, F_out_p), spk_dtype),   # spikes, every step
            jax.ShapeDtypeStruct((B_p, F_out_p), f32),            # final membrane
        ),
        grid_spec=pltpu.PrefetchScalarGridSpec(
            num_scalar_prefetch=0,
            grid=grid,
            in_specs=[
                # x: new (chunk, batch-tile) block every grid step
                pl.BlockSpec((time_chunk, batch_tile, F_in), lambda i, t: (t, i, 0)),
                # weight / bias: constant block index -> resident in VMEM, one DMA total
                pl.BlockSpec((F_in, F_out_p), lambda i, t: (0, 0)),
                pl.BlockSpec((1, F_out_p), lambda i, t: (0, 0)),
                # initial membrane: one block per batch tile
                pl.BlockSpec((batch_tile, F_out_p), lambda i, t: (i, 0)),
            ],
            out_specs=[
                pl.BlockSpec((time_chunk, batch_tile, F_out_p), lambda i, t: (t, i, 0)),
                # membrane accumulator: constant over the time axis -> stays in VMEM,
                # written back to HBM once per batch tile
                pl.BlockSpec((batch_tile, F_out_p), lambda i, t: (i, 0)),
            ],
        ),
        # Update the membrane state in place (mem0 input idx 3 -> mem_final output idx 1).
        input_output_aliases={3: 1},
        compiler_params=pltpu.CompilerParams(
            # batch tiles are independent (v7x: split across both TensorCores);
            # the time axis is a recurrence and must stay sequential.
            dimension_semantics=("parallel", "arbitrary"),
        ),
    )(x_p, w_p, b_p, m_p)

    return spk_p[:, :B, :F_out], mem_p[:B, :F_out]


if __name__ == "__main__":
    # Small shapes consistent with nn.Linear(in_features, out_features) driven
    # over a T-step spike train.
    T, B, F_IN, F_OUT = 8, 8, 32, 16

    key = jax.random.PRNGKey(0)
    k_x, k_w, k_b = jax.random.split(key, 3)

    # Deterministic param init mimicking nn.Linear: U(-1/sqrt(in), 1/sqrt(in)).
    bound = 1.0 / jnp.sqrt(jnp.float32(F_IN))
    weight = jax.random.uniform(k_w, (F_OUT, F_IN), jnp.float32, -bound, bound)
    bias = jax.random.uniform(k_b, (F_OUT,), jnp.float32, -bound, bound)

    # Inputs; scaled so some neurons actually cross the threshold.
    x_seq = jax.random.normal(k_x, (T, B, F_IN), jnp.float32) * 3.0

    # Run the fused kernel once over the whole spike train (f32 matmul for
    # bit-parity validation; pass matmul_dtype=jnp.bfloat16 on v6e/v7x in prod).
    spk, mem_final = spiking_layer_forward(x_seq, weight, bias)
    jax.block_until_ready((spk, mem_final))

    # Pure-JAX reference: per-timestep Linear + Leaky LIF with subtract reset.
    mem_r = jnp.zeros((B, F_OUT), jnp.float32)
    spk_steps = []
    for t in range(T):
        cur = jnp.dot(x_seq[t], weight.T, precision=jax.lax.Precision.HIGHEST) + bias
        reset = jnp.where(mem_r > THRESHOLD, THRESHOLD, 0.0)
        mem_r = BETA * mem_r + cur - reset
        spk_steps.append((mem_r > THRESHOLD).astype(jnp.float32))
    spk_ref = jnp.stack(spk_steps)

    assert spk.shape == (T, B, F_OUT) and mem_final.shape == (B, F_OUT)
    assert jnp.allclose(mem_final, mem_r, atol=1e-4, rtol=1e-4), "membrane mismatch"
    assert jnp.array_equal(spk, spk_ref), "spike mismatch"
    assert int(spk.sum()) > 0, "no neuron fired; test is degenerate"

    # TODO(synk): snnTorch's ATan surrogate gradient (backward pass) is not
    # implemented; this kernel covers the forward spike/membrane computation only.

    print("KERNEL_OK")
</pallas_src>

<mosaic_0001>
module attributes {stable_mosaic.version = 11 : i64} {
  func.func @_spiking_kernel(%arg0: i32, %arg1: i32, %arg2: memref<8x8x32xf32, #tpu.memory_space<vmem>>, %arg3: memref<32x128xf32, #tpu.memory_space<vmem>>, %arg4: memref<1x128xf32, #tpu.memory_space<vmem>>, %arg5: memref<8x128xf32, #tpu.memory_space<vmem>>, %arg6: memref<8x8x128xf32, #tpu.memory_space<vmem>>, %arg7: memref<8x128xf32, #tpu.memory_space<vmem>>) attributes {dimension_semantics = [#tpu.dimension_semantics<parallel>, #tpu.dimension_semantics<arbitrary>], iteration_bounds = array<i64: 1, 1>, scalar_prefetch = 0 : i64, scratch_operands = 0 : i64, tpu.core_type = #tpu.core_type<tc>, window_params = [{transform_indices = @transform_0, window_bounds = array<i64: 8, 8, 32>}, {pipeline_mode = #tpu.pipeline_mode<synchronous>, transform_indices = @transform_1, window_bounds = array<i64: 32, 128>}, {pipeline_mode = #tpu.pipeline_mode<synchronous>, transform_indices = @transform_2, window_bounds = array<i64: 1, 128>}, {transform_indices = @transform_3, window_bounds = array<i64: 8, 128>}, {transform_indices = @transform_4, window_bounds = array<i64: 8, 8, 128>}, {transform_indices = @transform_5, window_bounds = array<i64: 8, 128>}]} {
    %c0_i32 = arith.constant 0 : i32
    %0 = arith.cmpi eq, %arg1, %c0_i32 : i32
    %1 = arith.extui %0 : i1 to i32
    %c0_i32_0 = arith.constant 0 : i32
    %2 = arith.cmpi ne, %1, %c0_i32_0 : i32
    scf.if %2 {
      %c0_53 = arith.constant 0 : index
      %c0_54 = arith.constant 0 : index
      %128 = vector.load %arg5[%c0_53, %c0_54] : memref<8x128xf32, #tpu.memory_space<vmem>>, vector<8x128xf32>
      %c0_55 = arith.constant 0 : index
      %c0_56 = arith.constant 0 : index
      %129 = vector.load %arg7[%c0_55, %c0_56] : memref<8x128xf32, #tpu.memory_space<vmem>>, vector<8x128xf32>
      tpu.vector_store %arg7[%c0_55, %c0_56], %128 {strides = array<i32>} : memref<8x128xf32, #tpu.memory_space<vmem>>, vector<8x128xf32>,
    } else {
    }
    %c0 = arith.constant 0 : index
    %c0_1 = arith.constant 0 : index
    %c0_2 = arith.constant 0 : index
    %3 = vector.load %arg2[%c0, %c0_1, %c0_2] : memref<8x8x32xf32, #tpu.memory_space<vmem>>, vector<8x8x32xf32>
    %4 = vector.shape_cast %3 : vector<8x8x32xf32> to vector<64x32xf32>
    %c0_3 = arith.constant 0 : index
    %c0_4 = arith.constant 0 : index
    %5 = vector.load %arg3[%c0_3, %c0_4] : memref<32x128xf32, #tpu.memory_space<vmem>>, vector<32x128xf32>
    %cst = arith.constant dense<0.000000e+00> : vector<64x128xf32>
    %6 = tpu.matmul %4, %5, %cst {dimension_numbers = #tpu.dot_dimension_numbers<[1], [0], [0], [1], [0, 0, 1, 1], [], []>} : vector<64x32xf32>, vector<32x128xf32>, vector<64x128xf32> -> vector<64x128xf32>
    %c0_5 = arith.constant 0 : index
    %c0_6 = arith.constant 0 : index
    %7 = vector.load %arg4[%c0_5, %c0_6] : memref<1x128xf32, #tpu.memory_space<vmem>>, vector<1x128xf32>
    %8 = vector.broadcast %7 : vector<1x128xf32> to vector<64x128xf32>
    %9 = arith.addf %6, %8 : vector<64x128xf32>
    %c0_7 = arith.constant 0 : index
    %c0_8 = arith.constant 0 : index
    %10 = vector.load %arg7[%c0_7, %c0_8] : memref<8x128xf32, #tpu.memory_space<vmem>>, vector<8x128xf32>
    %cst_9 = arith.constant 1.000000e+00 : f32
    %11 = vector.broadcast %cst_9 : f32 to vector<8x128xf32>
    %12 = arith.cmpf ogt, %10, %11 : vector<8x128xf32>
    %13 = arith.extui %12 : vector<8x128xi1> to vector<8x128xi32>
    %14 = arith.sitofp %13 : vector<8x128xi32> to vector<8x128xf32>
    %15 = vector.extract_strided_slice %9 {offsets = [0, 0], sizes = [8, 128], strides = [1, 1]} : vector<64x128xf32> to vector<8x128xf32>
    %cst_10 = arith.constant 0.949999988 : f32
    %16 = vector.broadcast %cst_10 : f32 to vector<8x128xf32>
    %17 = arith.mulf %16, %10 : vector<8x128xf32>
    %18 = arith.addf %17, %15 : vector<8x128xf32>
    %cst_11 = arith.constant 1.000000e+00 : f32
    %19 = vector.broadcast %cst_11 : f32 to vector<8x128xf32>
    %20 = arith.mulf %14, %19 : vector<8x128xf32>
    %21 = arith.subf %18, %20 : vector<8x128xf32>
    %cst_12 = arith.constant 1.000000e+00 : f32
    %22 = vector.broadcast %cst_12 : f32 to vector<8x128xf32>
    %23 = arith.cmpf ogt, %21, %22 : vector<8x128xf32>
    %24 = arith.extui %23 : vector<8x128xi1> to vector<8x128xi32>
    %25 = arith.sitofp %24 : vector<8x128xi32> to vector<8x128xf32>
    %c0_13 = arith.constant 0 : index
    %c0_14 = arith.constant 0 : index
    %c0_15 = arith.constant 0 : index
    %26 = vector.load %arg6[%c0_13, %c0_14, %c0_15] : memref<8x8x128xf32, #tpu.memory_space<vmem>>, vector<1x8x128xf32>
    %27 = vector.shape_cast %26 : vector<1x8x128xf32> to vector<8x128xf32>
    %28 = vector.shape_cast %25 : vector<8x128xf32> to vector<1x8x128xf32>
    tpu.vector_store %arg6[%c0_13, %c0_14, %c0_15], %28 {strides = array<i32>} : memref<8x8x128xf32, #tpu.memory_space<vmem>>, vector<1x8x128xf32>,
    %29 = vector.extract_strided_slice %9 {offsets = [8, 0], sizes = [8, 128], strides = [1, 1]} : vector<64x128xf32> to vector<8x128xf32>
    %cst_16 = arith.constant 0.949999988 : f32
    %30 = vector.broadcast %cst_16 : f32 to vector<8x128xf32>
    %31 = arith.mulf %30, %21 : vector<8x128xf32>
    %32 = arith.addf %31, %29 : vector<8x128xf32>
    %cst_17 = arith.constant 1.000000e+00 : f32
    %33 = vector.broadcast %cst_17 : f32 to vector<8x128xf32>
    %34 = arith.mulf %25, %33 : vector<8x128xf32>
    %35 = arith.subf %32, %34 : vector<8x128xf32>
    %cst_18 = arith.constant 1.000000e+00 : f32
    %36 = vector.broadcast %cst_18 : f32 to vector<8x128xf32>
    %37 = arith.cmpf ogt, %35, %36 : vector<8x128xf32>
    %38 = arith.extui %37 : vector<8x128xi1> to vector<8x128xi32>
    %39 = arith.sitofp %38 : vector<8x128xi32> to vector<8x128xf32>
    %c1 = arith.constant 1 : index
    %c0_19 = arith.constant 0 : index
    %c0_20 = arith.constant 0 : index
    %40 = vector.load %arg6[%c1, %c0_19, %c0_20] : memref<8x8x128xf32, #tpu.memory_space<vmem>>, vector<1x8x128xf32>
    %41 = vector.shape_cast %40 : vector<1x8x128xf32> to vector<8x128xf32>
    %42 = vector.shape_cast %39 : vector<8x128xf32> to vector<1x8x128xf32>
    tpu.vector_store %arg6[%c1, %c0_19, %c0_20], %42 {strides = array<i32>} : memref<8x8x128xf32, #tpu.memory_space<vmem>>, vector<1x8x128xf32>,
    %43 = vector.extract_strided_slice %9 {offsets = [16, 0], sizes = [8, 128], strides = [1, 1]} : vector<64x128xf32> to vector<8x128xf32>
    %cst_21 = arith.constant 0.949999988 : f32
    %44 = vector.broadcast %cst_21 : f32 to vector<8x128xf32>
    %45 = arith.mulf %44, %35 : vector<8x128xf32>
    %46 = arith.addf %45, %43 : vector<8x128xf32>
    %cst_22 = arith.constant 1.000000e+00 : f32
    %47 = vector.broadcast %cst_22 : f32 to vector<8x128xf32>
    %48 = arith.mulf %39, %47 : vector<8x128xf32>
    %49 = arith.subf %46, %48 : vector<8x128xf32>
    %cst_23 = arith.constant 1.000000e+00 : f32
    %50 = vector.broadcast %cst_23 : f32 to vector<8x128xf32>
    %51 = arith.cmpf ogt, %49, %50 : vector<8x128xf32>
    %52 = arith.extui %51 : vector<8x128xi1> to vector<8x128xi32>
    %53 = arith.sitofp %52 : vector<8x128xi32> to vector<8x128xf32>
    %c2 = arith.constant 2 : index
    %c0_24 = arith.constant 0 : index
    %c0_25 = arith.constant 0 : index
    %54 = vector.load %arg6[%c2, %c0_24, %c0_25] : memref<8x8x128xf32, #tpu.memory_space<vmem>>, vector<1x8x128xf32>
    %55 = vector.shape_cast %54 : vector<1x8x128xf32> to vector<8x128xf32>
    %56 = vector.shape_cast %53 : vector<8x128xf32> to vector<1x8x128xf32>
    tpu.vector_store %arg6[%c2, %c0_24, %c0_25], %56 {strides = array<i32>} : memref<8x8x128xf32, #tpu.memory_space<vmem>>, vector<1x8x128xf32>,
    %57 = vector.extract_strided_slice %9 {offsets = [24, 0], sizes = [8, 128], strides = [1, 1]} : vector<64x128xf32> to vector<8x128xf32>
    %cst_26 = arith.constant 0.949999988 : f32
    %58 = vector.broadcast %cst_26 : f32 to vector<8x128xf32>
    %59 = arith.mulf %58, %49 : vector<8x128xf32>
    %60 = arith.addf %59, %57 : vector<8x128xf32>
    %cst_27 = arith.constant 1.000000e+00 : f32
    %61 = vector.broadcast %cst_27 : f32 to vector<8x128xf32>
    %62 = arith.mulf %53, %61 : vector<8x128xf32>
    %63 = arith.subf %60, %62 : vector<8x128xf32>
    %cst_28 = arith.constant 1.000000e+00 : f32
    %64 = vector.broadcast %cst_28 : f32 to vector<8x128xf32>
    %65 = arith.cmpf ogt, %63, %64 : vector<8x128xf32>
    %66 = arith.extui %65 : vector<8x128xi1> to vector<8x128xi32>
    %67 = arith.sitofp %66 : vector<8x128xi32> to vector<8x128xf32>
    %c3 = arith.constant 3 : index
    %c0_29 = arith.constant 0 : index
    %c0_30 = arith.constant 0 : index
    %68 = vector.load %arg6[%c3, %c0_29, %c0_30] : memref<8x8x128xf32, #tpu.memory_space<vmem>>, vector<1x8x128xf32>
    %69 = vector.shape_cast %68 : vector<1x8x128xf32> to vector<8x128xf32>
    %70 = vector.shape_cast %67 : vector<8x128xf32> to vector<1x8x128xf32>
    tpu.vector_store %arg6[%c3, %c0_29, %c0_30], %70 {strides = array<i32>} : memref<8x8x128xf32, #tpu.memory_space<vmem>>, vector<1x8x128xf32>,
    %71 = vector.extract_strided_slice %9 {offsets = [32, 0], sizes = [8, 128], strides = [1, 1]} : vector<64x128xf32> to vector<8x128xf32>
    %cst_31 = arith.constant 0.949999988 : f32
    %72 = vector.broadcast %cst_31 : f32 to vector<8x128xf32>
    %73 = arith.mulf %72, %63 : vector<8x128xf32>
    %74 = arith.addf %73, %71 : vector<8x128xf32>
    %cst_32 = arith.constant 1.000000e+00 : f32
    %75 = vector.broadcast %cst_32 : f32 to vector<8x128xf32>
    %76 = arith.mulf %67, %75 : vector<8x128xf32>
    %77 = arith.subf %74, %76 : vector<8x128xf32>
    %cst_33 = arith.constant 1.000000e+00 : f32
    %78 = vector.broadcast %cst_33 : f32 to vector<8x128xf32>
    %79 = arith.cmpf ogt, %77, %78 : vector<8x128xf32>
    %80 = arith.extui %79 : vector<8x128xi1> to vector<8x128xi32>
    %81 = arith.sitofp %80 : vector<8x128xi32> to vector<8x128xf32>
    %c4 = arith.constant 4 : index
    %c0_34 = arith.constant 0 : index
    %c0_35 = arith.constant 0 : index
    %82 = vector.load %arg6[%c4, %c0_34, %c0_35] : memref<8x8x128xf32, #tpu.memory_space<vmem>>, vector<1x8x128xf32>
    %83 = vector.shape_cast %82 : vector<1x8x128xf32> to vector<8x128xf32>
    %84 = vector.shape_cast %81 : vector<8x128xf32> to vector<1x8x128xf32>
    tpu.vector_store %arg6[%c4, %c0_34, %c0_35], %84 {strides = array<i32>} : memref<8x8x128xf32, #tpu.memory_space<vmem>>, vector<1x8x128xf32>,
    %85 = vector.extract_strided_slice %9 {offsets = [40, 0], sizes = [8, 128], strides = [1, 1]} : vector<64x128xf32> to vector<8x128xf32>
    %cst_36 = arith.constant 0.949999988 : f32
    %86 = vector.broadcast %cst_36 : f32 to vector<8x128xf32>
    %87 = arith.mulf %86, %77 : vector<8x128xf32>
    %88 = arith.addf %87, %85 : vector<8x128xf32>
    %cst_37 = arith.constant 1.000000e+00 : f32
    %89 = vector.broadcast %cst_37 : f32 to vector<8x128xf32>
    %90 = arith.mulf %81, %89 : vector<8x128xf32>
    %91 = arith.subf %88, %90 : vector<8x128xf32>
    %cst_38 = arith.constant 1.000000e+00 : f32
    %92 = vector.broadcast %cst_38 : f32 to vector<8x128xf32>
    %93 = arith.cmpf ogt, %91, %92 : vector<8x128xf32>
    %94 = arith.extui %93 : vector<8x128xi1> to vector<8x128xi32>
    %95 = arith.sitofp %94 : vector<8x128xi32> to vector<8x128xf32>
    %c5 = arith.constant 5 : index
    %c0_39 = arith.constant 0 : index
    %c0_40 = arith.constant 0 : index
    %96 = vector.load %arg6[%c5, %c0_39, %c0_40] : memref<8x8x128xf32, #tpu.memory_space<vmem>>, vector<1x8x128xf32>
    %97 = vector.shape_cast %96 : vector<1x8x128xf32> to vector<8x128xf32>
    %98 = vector.shape_cast %95 : vector<8x128xf32> to vector<1x8x128xf32>
    tpu.vector_store %arg6[%c5, %c0_39, %c0_40], %98 {strides = array<i32>} : memref<8x8x128xf32, #tpu.memory_space<vmem>>, vector<1x8x128xf32>,
    %99 = vector.extract_strided_slice %9 {offsets = [48, 0], sizes = [8, 128], strides = [1, 1]} : vector<64x128xf32> to vector<8x128xf32>
    %cst_41 = arith.constant 0.949999988 : f32
    %100 = vector.broadcast %cst_41 : f32 to vector<8x128xf32>
    %101 = arith.mulf %100, %91 : vector<8x128xf32>
    %102 = arith.addf %101, %99 : vector<8x128xf32>
    %cst_42 = arith.constant 1.000000e+00 : f32
    %103 = vector.broadcast %cst_42 : f32 to vector<8x128xf32>
    %104 = arith.mulf %95, %103 : vector<8x128xf32>
    %105 = arith.subf %102, %104 : vector<8x128xf32>
    %cst_43 = arith.constant 1.000000e+00 : f32
    %106 = vector.broadcast %cst_43 : f32 to vector<8x128xf32>
    %107 = arith.cmpf ogt, %105, %106 : vector<8x128xf32>
    %108 = arith.extui %107 : vector<8x128xi1> to vector<8x128xi32>
    %109 = arith.sitofp %108 : vector<8x128xi32> to vector<8x128xf32>
    %c6 = arith.constant 6 : index
    %c0_44 = arith.constant 0 : index
    %c0_45 = arith.constant 0 : index
    %110 = vector.load %arg6[%c6, %c0_44, %c0_45] : memref<8x8x128xf32, #tpu.memory_space<vmem>>, vector<1x8x128xf32>
    %111 = vector.shape_cast %110 : vector<1x8x128xf32> to vector<8x128xf32>
    %112 = vector.shape_cast %109 : vector<8x128xf32> to vector<1x8x128xf32>
    tpu.vector_store %arg6[%c6, %c0_44, %c0_45], %112 {strides = array<i32>} : memref<8x8x128xf32, #tpu.memory_space<vmem>>, vector<1x8x128xf32>,
    %113 = vector.extract_strided_slice %9 {offsets = [56, 0], sizes = [8, 128], strides = [1, 1]} : vector<64x128xf32> to vector<8x128xf32>
    %cst_46 = arith.constant 0.949999988 : f32
    %114 = vector.broadcast %cst_46 : f32 to vector<8x128xf32>
    %115 = arith.mulf %114, %105 : vector<8x128xf32>
    %116 = arith.addf %115, %113 : vector<8x128xf32>
    %cst_47 = arith.constant 1.000000e+00 : f32
    %117 = vector.broadcast %cst_47 : f32 to vector<8x128xf32>
    %118 = arith.mulf %109, %117 : vector<8x128xf32>
    %119 = arith.subf %116, %118 : vector<8x128xf32>
    %cst_48 = arith.constant 1.000000e+00 : f32
    %120 = vector.broadcast %cst_48 : f32 to vector<8x128xf32>
    %121 = arith.cmpf ogt, %119, %120 : vector<8x128xf32>
    %122 = arith.extui %121 : vector<8x128xi1> to vector<8x128xi32>
    %123 = arith.sitofp %122 : vector<8x128xi32> to vector<8x128xf32>
    %c7 = arith.constant 7 : index
    %c0_49 = arith.constant 0 : index
    %c0_50 = arith.constant 0 : index
    %124 = vector.load %arg6[%c7, %c0_49, %c0_50] : memref<8x8x128xf32, #tpu.memory_space<vmem>>, vector<1x8x128xf32>
    %125 = vector.shape_cast %124 : vector<1x8x128xf32> to vector<8x128xf32>
    %126 = vector.shape_cast %123 : vector<8x128xf32> to vector<1x8x128xf32>
    tpu.vector_store %arg6[%c7, %c0_49, %c0_50], %126 {strides = array<i32>} : memref<8x8x128xf32, #tpu.memory_space<vmem>>, vector<1x8x128xf32>,
    %c0_51 = arith.constant 0 : index
    %c0_52 = arith.constant 0 : index
    %127 = vector.load %arg7[%c0_51, %c0_52] : memref<8x128xf32, #tpu.memory_space<vmem>>, vector<8x128xf32>
    tpu.vector_store %arg7[%c0_51, %c0_52], %119 {strides = array<i32>} : memref<8x128xf32, #tpu.memory_space<vmem>>, vector<8x128xf32>,
    return
  }
  func.func @transform_0(%arg0: i32, %arg1: i32) -> (i32, i32, i32) {
    %c0_i32 = arith.constant 0 : i32
    %c0_i32_0 = arith.constant 0 : i32
    return %arg1, %arg0, %c0_i32 : i32, i32, i32
  }
  func.func @transform_1(%arg0: i32, %arg1: i32) -> (i32, i32) {
    %c0_i32 = arith.constant 0 : i32
    %c0_i32_0 = arith.constant 0 : i32
    %c0_i32_1 = arith.constant 0 : i32
    return %c0_i32, %c0_i32_0 : i32, i32
  }
  func.func @transform_2(%arg0: i32, %arg1: i32) -> (i32, i32) {
    %c0_i32 = arith.constant 0 : i32
    %c0_i32_0 = arith.constant 0 : i32
    %c0_i32_1 = arith.constant 0 : i32
    return %c0_i32, %c0_i32_0 : i32, i32
  }
  func.func @transform_3(%arg0: i32, %arg1: i32) -> (i32, i32) {
    %c0_i32 = arith.constant 0 : i32
    %c0_i32_0 = arith.constant 0 : i32
    return %arg0, %c0_i32 : i32, i32
  }
  func.func @transform_4(%arg0: i32, %arg1: i32) -> (i32, i32, i32) {
    %c0_i32 = arith.constant 0 : i32
    %c0_i32_0 = arith.constant 0 : i32
    return %arg1, %arg0, %c0_i32 : i32, i32, i32
  }
  func.func @transform_5(%arg0: i32, %arg1: i32) -> (i32, i32) {
    %c0_i32 = arith.constant 0 : i32
    %c0_i32_0 = arith.constant 0 : i32
    return %arg0, %c0_i32 : i32, i32
  }
}

</mosaic_0001>

<bundles_post_ra>
// kernel: tpu_custom_call.1
= control target key start
LH: loop header
LB: loop body
LE: loop exit
PB: predicated region body
PF: predicated region fallthrough
CT: control target
= control target key end

     0   :  { %11 = vsyncpa [#allocation3], 0  ;;  %s571_s0 = inlined_call_operand.hbm [shape: f32[8,8,32], index: 0, kind: input, shape index: {}]   ;;  %s572_s1 = inlined_call_operand.hbm [shape: f32[32,128], index: 1, kind: input, shape index: {}]   ;;  %s573_s2 = inlined_call_operand.vmem [shape: f32[1,128], index: 2, kind: input, shape index: {}]   ;;  %s574_s3 = inlined_call_operand.hbm [shape: f32[8,128], index: 3, kind: input, shape index: {}, may-alias: {3,5}]   ;;  %s575_s4 = inlined_call_operand.hbm [shape: f32[8,8,128], index: 4, kind: output, shape index: {0}]   ;;  %s576_s5 = inlined_call_operand.hbm [shape: f32[8,128], index: 5, kind: output, shape index: {1}, may-alias: {3,5}]  }
   0x1   :  { %12 = vsyncpa [#allocation6], 0 }
   0x2   :  { %13 = vsyncpa [#allocation4], 0 }
   0x3   :  { %14 = vsyncpa [#allocation10], 0  ;;  %s489_s18 = smov [#allocation5]   ;;  %s490_s20 = smov [#allocation2]  }
   0x4   :  { %s32_s19 = sshll.u32 %s489_s18, 4  ;;  %s20_s21 = sshll.u32 %s490_s20, 4  ;;  %s33_s19 = int_to_ptr.vmem [resolvable:$true] %s32_s19  ;;  %s21_s21 = int_to_ptr.vmem [resolvable:$true] %s20_s21 }
   0x5   :  { %s389_s22 = scalar_lea.vmem %s33_s19, 512  ;;  %p394_p1 = scmp.lt.s32.totalorder %s33_s19, %s33_s19 }
   0x6   :  { %p390_p0 = scmp.ne.s32.totalorder %s33_s19, %s389_s22  ;;  %p395_p2 = scmp.lt.s32.totalorder %s389_s22, %s389_s22 }
   0x8   :  { %p396_p3 = por %p395_p2, %p394_p1 }
   0xa   :  { %p397_p4 = pnand %p396_p3, %p390_p0 }
   0xc   :  { %400 = shalt.err (!%p397_p4)
}
   0xd   :  { %s491_s23 = smov 128   ;;  %s492_s24 = smov 8  }
   0xe   :  { %38 = dma.hbm_to_vmem [thread:$0]  %s572_s1, 512, %s33_s19, [#allocation6], %s491_s23, %s491_s23, %s492_s24  }
   0xf   :  { %s409_s27 = scalar_lea.vmem %s21_s21, 1024  ;;  %p414_p6 = scmp.lt.s32.totalorder %s21_s21, %s21_s21 }
  0x10   :  { %p410_p5 = scmp.ne.s32.totalorder %s21_s21, %s409_s27  ;;  %p415_p7 = scmp.lt.s32.totalorder %s409_s27, %s409_s27 }
  0x12   :  { %p416_p8 = por %p415_p7, %p414_p6 }
  0x14   :  { %p417_p9 = pnand %p416_p8, %p410_p5 }
  0x16   :  { %420 = shalt.err (!%p417_p9)
}
  0x17   :  { %26 = dma.hbm_to_vmem [thread:$0]  %s571_s0, 1024, %s21_s21, [#allocation3], %s491_s23, %s491_s23, %s492_s24  }
  0x18   :  { %s493_s30 = smov [#allocation7]  }
  0x19   :  { %s47_s6 = sshll.u32 %s493_s30, 4  ;;  %s48_s6 = int_to_ptr.vmem [resolvable:$true] %s47_s6 }
  0x1a   :  { %s429_s7 = scalar_lea.vmem %s48_s6, 128  ;;  %p434_p11 = scmp.lt.s32.totalorder %s48_s6, %s48_s6 }
  0x1b   :  { %p430_p10 = scmp.ne.s32.totalorder %s48_s6, %s429_s7  ;;  %p435_p12 = scmp.lt.s32.totalorder %s429_s7, %s429_s7 }
  0x1d   :  { %p436_p13 = por %p435_p12, %p434_p11 }
  0x1f   :  { %p437_p0 = pnand %p436_p13, %p430_p10 }
  0x21   :  { %440 = shalt.err (!%p437_p0)
}
  0x22   :  { %50 = dma.hbm_to_vmem [thread:$0]  %s574_s3, 128, %s48_s6, [#allocation6]  }
  0x23   :  { %481 = dma.done.wait [#allocation3], 1024  }
  0x24   :  { %482 = vsyncadd [#allocation3], 4294966272 }
  0x25   :  { %483 = dma.done.wait [#allocation6], 640  }
  0x26   :  { %484 = vsyncadd [#allocation6], 4294966656  ;;  %vm85_vm0 = vcmask 261120   ;;  %v77_v0 = vld [vmem:[#allocation5 + $0x18] sm:$0xff]  ;;  %v76_v1 = vld [vmem:[#allocation5 + $0x10] sm:$0xff]  ;;  %v494_v18 = vmov 0.0  }
  0x27   :  { %345 = vmatprep.subr.mxu0 %v77_v0  ;;  %v66_v2 = vld [vmem:[#allocation2] sm:$0xff]  ;;  %365 = vmatprep.subr.mxu1 %v77_v0  ;;  %v75_v3 = vld [vmem:[#allocation5 + $0x8] sm:$0xff]  ;;  %v68_v6 = vld [vmem:[#allocation2 + $0x10] sm:$0xff]  ;;  %s496_s10 = smov [#allocation8]  }
  0x28   :  { %346 = vmatpush3.msra.mxu0 %v77_v0  ;;  %353 = vmatprep.mubr.msk.f32.mxu0 %vm85_vm0, %v66_v2  ;;  %v74_v4 = vld [vmem:[#allocation5] sm:$0xff]  ;;  %v67_v5 = vld [vmem:[#allocation2 + $0x8] sm:$0xff]  ;;  %v72_v9 = vld [vmem:[#allocation2 + $0x30] sm:$0xff]  ;;  %s288_s11 = sshll.u32 %s496_s10, 4  ;;  %s289_s11 = int_to_ptr.vmem [resolvable:$true] %s288_s11 }
  0x29   :  { %347 = vmatprep.subr.mxu0 %v76_v1  ;;  %369 = vmatpush3.msra.mxu1 %v77_v0  ;;  %v70_v7 = vld [vmem:[#allocation2 + $0x20] sm:$0xff]  ;;  %v71_v8 = vld [vmem:[#allocation2 + $0x28] sm:$0xff]  ;;  %v69_v10 = vld [vmem:[#allocation2 + $0x18] sm:$0xff] }
  0x2a   :  { %348 = vmatpush3.msra.mxu0 %v76_v1  ;;  %366 = vmatprep.subr.mxu1 %v76_v1  ;;  %v73_v11 = vld [vmem:[#allocation2 + $0x38] sm:$0xff]  ;;  %v64_v12 = vld [vmem:[#allocation7] sm:$0xff] }
  0x2b   :  { %349 = vmatprep.subr.mxu0 %v75_v3  ;;  %370 = vmatpush3.msra.mxu1 %v76_v1  ;;  %vm216_vm1 = vcmp.gt.f32.partialorder %v64_v12, 1.0  ;;  %v219_v14 = vmul.f32 0.95, %v64_v12  ;;  %v315_v15 = vld [vmem:[%s573_s2] ss:$0 sm:$0xff]  ;;  %s495_s2 = smov [#allocation9]  }
  0x2c   :  { %350 = vmatpush3.msra.mxu0 %v75_v3  ;;  %367 = vmatprep.subr.mxu1 %v75_v3  ;;  %v324_v19 = vsel %vm216_vm1, 1.0, %v494_v18  ;;  %s301_s9 = sshll.u32 %s495_s2, 4  ;;  %s302_s9 = int_to_ptr.vmem [resolvable:$true] %s301_s9 }
  0x2d   :  { %351 = vmatprep.subr.mxu0 %v74_v4  ;;  %371 = vmatpush3.msra.mxu1 %v75_v3  ;;  %s441_s12 = scalar_lea.vmem %s302_s9, 128  ;;  %p446_p2 = scmp.lt.s32.totalorder %s302_s9, %s302_s9 }
  0x2e   :  { %352 = vmatpush3.msra.mxu0 %v74_v4  ;;  %368 = vmatprep.subr.mxu1 %v74_v4  ;;  %p442_p1 = scmp.ne.s32.totalorder %s302_s9, %s441_s12  ;;  %p447_p3 = scmp.lt.s32.totalorder %s441_s12, %s441_s12 }
  0x2f   :  { %354 = vmatmul.mubr.msk.f32.vlgmr.msra.gmra.mxu0 %vm85_vm0, %v67_v5  ;;  %372 = vmatpush3.msra.mxu1 %v74_v4 }
  0x30   :  { %356 = vmatprep.mubr.msk.f32.mxu0 %vm85_vm0, %v68_v6  ;;  %359 = vmatprep.mubr.msk.f32.mxu1 %vm85_vm0, %v70_v7  ;;  %p448_p4 = por %p447_p3, %p446_p2 }
  0x31   :  { %360 = vmatmul.mubr.msk.f32.vlgmr.msra.gmra.mxu1 %vm85_vm0, %v71_v8 }
  0x32   :  { %362 = vmatprep.mubr.msk.f32.mxu1 %vm85_vm0, %v72_v9  ;;  %p449_p5 = pnand %p448_p4, %p442_p1 }
  0x33   :  { %357 = vmatmul.mubr.msk.f32.gmra.mxu0 %vm85_vm0, %v69_v10 }
  0x35   :  { %363 = vmatmul.mubr.msk.f32.gmra.mxu1 %vm85_vm0, %v73_v11 }
  0xef   :  { %v355_v13 = vpop.f32.mrf.mxu0 }
  0xf0   :  { %v182_v23 = vadd.f32 %v355_v13, %v315_v15 }
  0xf1   :  { %v176_v16 = vpop.f32.mrf.mxu0  ;;  %v361_v34 = vpop.f32.mrf.mxu1 }
  0xf2   :  { %v177_v17 = vadd.f32 %v315_v15, %v176_v16  ;;  %v202_v47 = vadd.f32 %v361_v34, %v315_v15 }
  0xf3   :  { %v358_v22 = vpop.f32.mrf.mxu0  ;;  %v196_v39 = vpop.f32.mrf.mxu1 }
  0xf4   :  { %v220_v20 = vadd.f32 %v219_v14, %v177_v17  ;;  %v192_v35 = vadd.f32 %v358_v22, %v315_v15  ;;  %v197_v41 = vadd.f32 %v315_v15, %v196_v39 }
  0xf5   :  { %v186_v27 = vpop.f32.mrf.mxu0  ;;  %v364_v46 = vpop.f32.mrf.mxu1 }
  0xf6   :  { %v221_v21 = vsub.f32 %v220_v20, %v324_v19  ;;  %v187_v29 = vadd.f32 %v315_v15, %v186_v27  ;;  %v212_v58 = vadd.f32 %v364_v46, %v315_v15 }
  0xf7   :  { %v206_v51 = vpop.f32.mrf.mxu1 }
  0xf8   :  { %vm222_vm2 = vcmp.gt.f32.partialorder %v221_v21, 1.0  ;;  %v226_v24 = vmul.f32 0.95, %v221_v21  ;;  %v207_v53 = vadd.f32 %v315_v15, %v206_v51 }
  0xf9   :  { %v325_v25 = vsel %vm222_vm2, 1.0, %v494_v18 }
  0xfa   :  { %225 = vst [vmem:[#allocation8] sm:$0xff] %v325_v25  ;;  %v227_v26 = vadd.f32 %v226_v24, %v182_v23 }
  0xfc   :  { %v228_v28 = vsub.f32 %v227_v26, %v325_v25 }
  0xfe   :  { %vm229_vm3 = vcmp.gt.f32.partialorder %v228_v28, 1.0  ;;  %v234_v30 = vmul.f32 0.95, %v228_v28 }
  0xff   :  { %v326_v31 = vsel %vm229_vm3, 1.0, %v494_v18 }
 0x100   :  { %233 = vst [vmem:[#allocation8 + $0x8] sm:$0xff] %v326_v31  ;;  %v235_v32 = vadd.f32 %v234_v30, %v187_v29 }
 0x102   :  { %v236_v33 = vsub.f32 %v235_v32, %v326_v31 }
 0x104   :  { %vm237_vm4 = vcmp.gt.f32.partialorder %v236_v33, 1.0  ;;  %v242_v36 = vmul.f32 0.95, %v236_v33 }
 0x105   :  { %v327_v37 = vsel %vm237_vm4, 1.0, %v494_v18 }
 0x106   :  { %241 = vst [vmem:[#allocation8 + $0x10] sm:$0xff] %v327_v37  ;;  %v243_v38 = vadd.f32 %v242_v36, %v192_v35 }
 0x108   :  { %v244_v40 = vsub.f32 %v243_v38, %v327_v37 }
 0x10a   :  { %vm245_vm5 = vcmp.gt.f32.partialorder %v244_v40, 1.0  ;;  %v250_v42 = vmul.f32 0.95, %v244_v40 }
 0x10b   :  { %v328_v43 = vsel %vm245_vm5, 1.0, %v494_v18 }
 0x10c   :  { %249 = vst [vmem:[#allocation8 + $0x18] sm:$0xff] %v328_v43  ;;  %v251_v44 = vadd.f32 %v250_v42, %v197_v41 }
 0x10e   :  { %v252_v45 = vsub.f32 %v251_v44, %v328_v43 }
 0x110   :  { %vm253_vm6 = vcmp.gt.f32.partialorder %v252_v45, 1.0  ;;  %v258_v48 = vmul.f32 0.95, %v252_v45 }
 0x111   :  { %v329_v49 = vsel %vm253_vm6, 1.0, %v494_v18 }
 0x112   :  { %257 = vst [vmem:[#allocation8 + $0x20] sm:$0xff] %v329_v49  ;;  %v259_v50 = vadd.f32 %v258_v48, %v202_v47 }
 0x114   :  { %v260_v52 = vsub.f32 %v259_v50, %v329_v49 }
 0x116   :  { %vm261_vm7 = vcmp.gt.f32.partialorder %v260_v52, 1.0  ;;  %v266_v54 = vmul.f32 0.95, %v260_v52 }
 0x117   :  { %v330_v55 = vsel %vm261_vm7, 1.0, %v494_v18 }
 0x118   :  { %265 = vst [vmem:[#allocation8 + $0x28] sm:$0xff] %v330_v55  ;;  %v267_v56 = vadd.f32 %v266_v54, %v207_v53 }
 0x11a   :  { %v268_v57 = vsub.f32 %v267_v56, %v330_v55 }
 0x11c   :  { %vm269_vm8 = vcmp.gt.f32.partialorder %v268_v57, 1.0  ;;  %v274_v59 = vmul.f32 0.95, %v268_v57 }
 0x11d   :  { %v331_v60 = vsel %vm269_vm8, 1.0, %v494_v18 }
 0x11e   :  { %273 = vst [vmem:[#allocation8 + $0x30] sm:$0xff] %v331_v60  ;;  %v275_v61 = vadd.f32 %v274_v59, %v212_v58 }
 0x120   :  { %v276_v62 = vsub.f32 %v275_v61, %v331_v60 }
 0x122   :  { %vm277_vm9 = vcmp.gt.f32.partialorder %v276_v62, 1.0  ;;  %282 = vst [vmem:[#allocation9] sm:$0xff] %v276_v62 }
 0x123   :  { %v332_v63 = vsel %vm277_vm9, 1.0, %v494_v18 }
 0x124   :  { %452 = shalt.err (!%p449_p5)
}
 0x125   :  { %304 = dma.vmem_to_hbm [thread:$0]  %s302_s9, 128, %s576_s5, [#allocation10]   ;;  %281 = vst [vmem:[#allocation8 + $0x38] sm:$0xff] %v332_v63 }
 0x126   :  { %s461_s15 = scalar_lea.vmem %s289_s11, 1024  ;;  %p466_p7 = scmp.lt.s32.totalorder %s289_s11, %s289_s11 }
 0x127   :  { %p462_p6 = scmp.ne.s32.totalorder %s289_s11, %s461_s15  ;;  %p467_p8 = scmp.lt.s32.totalorder %s461_s15, %s461_s15 }
 0x129   :  { %p468_p9 = por %p467_p8, %p466_p7 }
 0x12b   :  { %p469_p10 = pnand %p468_p9, %p462_p6 }
 0x12d   :  { %472 = shalt.err (!%p469_p10)
}
 0x12e   :  { %294 = dma.vmem_to_hbm [thread:$0]  %s289_s11, 1024, %s575_s4, [#allocation4], %s491_s23, %s491_s23, %s492_s24  }
 0x12f   :  { %485 = dma.done.wait [#allocation4], 1024  }
 0x130   :  { %486 = vsyncadd [#allocation4], 4294966272 }
 0x131   :  { %487 = dma.done.wait [#allocation10], 128  }
 0x132   :  { %488 = vsyncadd [#allocation10], 4294967168 }
 0x133   :  { %311 = vsyncpa [#allocation3], 1 }
 0x134   :  { %312 = vsyncpa [#allocation6], 1 }
 0x135   :  { %313 = vsyncpa [#allocation4], 1 }
 0x136   :  { %314 = vsyncpa [#allocation10], 1 }

</bundles_post_ra>
